<compile_context>
chip_gen: v7x
topology: tpu7x:2x2x1
jax: 0.10.0
libtpu: 0.0.40
codegen_flags: <defaults>
</compile_context>

<pallas_src>
import jax
import jax.numpy as jnp
from jax.experimental import pallas as pl
from jax.experimental.pallas import tpu as pltpu


def _round_up(x, m):
    return ((x + m - 1) // m) * m


def _roger_forward_kernel(mu_ref, gu_ref, gi_ref, bias_ref, out_ref):
    # gu_ref/gi_ref: (K, TB) f32 ; bias_ref: (2, TB) f32 ; out_ref: (1, TB) f32
    # mu_ref: (1, 1) f32 scalar in SMEM
    prod = gu_ref[...] * gi_ref[...]                       # VPU elementwise
    dot = jnp.sum(prod, axis=0, keepdims=True)             # XLU cross-sublane reduce -> (1, TB)
    bias = jnp.sum(bias_ref[...], axis=0, keepdims=True)   # bu + bi -> (1, TB)
    out_ref[...] = dot + bias + mu_ref[0, 0]               # lane-dense (1, TB) store


def roger_forward(gu, gi, bu, bi, mu, *, max_tb=16384):
    """gu, gi: [B, K] f32; bu, bi: [B, 1] f32; mu: [1, 1] f32. Returns xui: [B] f32."""
    B, K = gu.shape

    # Lane-dense layout plumbing (pure layout, no compute hoisted out of kernel):
    gu_t = gu.T                                           # [K, B]  batch on lanes
    gi_t = gi.T                                           # [K, B]
    bias = jnp.concatenate([bu.T, bi.T], axis=0)          # [2, B]  single DMA per block

    # Batch tile: multiple of 128 lanes, capped so double-buffered VMEM stays small
    # even on v7x (2 inputs x 2 buffers x K*TB*4 bytes ~= 8 MiB at TB=16384, K=32).
    TB = min(max_tb, _round_up(B, 128))
    B_pad = _round_up(B, TB)
    if B_pad != B:
        pad = B_pad - B
        gu_t = jnp.pad(gu_t, ((0, 0), (0, pad)))
        gi_t = jnp.pad(gi_t, ((0, 0), (0, pad)))
        bias = jnp.pad(bias, ((0, 0), (0, pad)))

    grid = (B_pad // TB,)

    out = pl.pallas_call(
        _roger_forward_kernel,
        out_shape=jax.ShapeDtypeStruct((1, B_pad), jnp.float32),
        grid=grid,
        in_specs=[
            pl.BlockSpec(memory_space=pltpu.SMEM),             # mu (1, 1) scalar
            pl.BlockSpec((K, TB), lambda i: (0, i)),           # gu^T block
            pl.BlockSpec((K, TB), lambda i: (0, i)),           # gi^T block
            pl.BlockSpec((2, TB), lambda i: (0, i)),           # packed [bu; bi] block
        ],
        out_specs=pl.BlockSpec((1, TB), lambda i: (0, i)),     # lane-dense output
        compiler_params=pltpu.CompilerParams(
            dimension_semantics=("parallel",),                 # shard batch across TCs
        ),
    )(mu, gu_t, gi_t, bias)

    return out[0, :B]  # drop pad; matches torch.squeeze([B]) semantics


def _xavier_uniform(key, shape):
    fan_in, fan_out = shape[1], shape[0]
    a = (6.0 / (fan_in + fan_out)) ** 0.5
    return jax.random.uniform(key, shape, jnp.float32, -a, a)


def _xavier_normal(key, shape):
    fan_in, fan_out = shape[1], shape[0]
    std = (2.0 / (fan_in + fan_out)) ** 0.5
    return jax.random.normal(key, shape, jnp.float32) * std


def _reference(gu, gi, bu, bi, mu):
    return jnp.sum(gu * gi, axis=1) + bu[:, 0] + bi[:, 0] + mu[0, 0]


if __name__ == "__main__":
    # Small, deterministic synthetic setup consistent with the module's forward:
    # a batch of (user, item) pairs with embed_k-dim embeddings and scalar biases.
    num_users, num_items = 16, 24
    embed_k = 32
    batch = 8

    key = jax.random.PRNGKey(0)
    k_gu, k_gi, k_bu, k_bi, k_mu, k_u, k_i = jax.random.split(key, 7)

    # Model parameters (shapes from __init__): Gu [U,K], Gi [I,K], Bu [U,1], Bi [I,1], Mu [1,1]
    Gu = _xavier_uniform(k_gu, (num_users, embed_k))
    Gi = _xavier_uniform(k_gi, (num_items, embed_k))
    Bu = _xavier_normal(k_bu, (num_users, 1))
    Bi = _xavier_normal(k_bi, (num_items, 1))
    Mu = _xavier_normal(k_mu, (1, 1))

    # A batch of user / item indices (as in predict()).
    users = jax.random.randint(k_u, (batch,), 0, num_users)
    items = jax.random.randint(k_i, (batch,), 0, num_items)

    gu = Gu[users]      # [B, K]
    gi = Gi[items]      # [B, K]
    bu = Bu[users]      # [B, 1]
    bi = Bi[items]      # [B, 1]

    # TODO(synk): propagate_embeddings / GCNConv / GATConv graph propagation is
    # training-time torch_geometric SparseTensor machinery, not part of forward();
    # it is not implemented here.

    xui = roger_forward(gu, gi, bu, bi, Mu)
    jax.block_until_ready(xui)
    ref = _reference(gu, gi, bu, bi, Mu)
    assert xui.shape == (batch,)
    assert jnp.allclose(xui, ref, atol=1e-5, rtol=1e-5)

    # Second check: a ragged batch with a small tile to exercise multi-step
    # pipelining (grid > 1) and the pad/slice path.
    batch2 = 300
    k_u2, k_i2 = jax.random.split(k_i, 2)
    users2 = jax.random.randint(k_u2, (batch2,), 0, num_users)
    items2 = jax.random.randint(k_i2, (batch2,), 0, num_items)
    gu2, gi2, bu2, bi2 = Gu[users2], Gi[items2], Bu[users2], Bi[items2]

    xui2 = roger_forward(gu2, gi2, bu2, bi2, Mu, max_tb=128)
    jax.block_until_ready(xui2)
    ref2 = _reference(gu2, gi2, bu2, bi2, Mu)
    assert xui2.shape == (batch2,)
    assert jnp.allclose(xui2, ref2, atol=1e-5, rtol=1e-5)

    print("KERNEL_OK")
</pallas_src>

<mosaic_0001>
module attributes {stable_mosaic.version = 11 : i64} {
  func.func @_roger_forward_kernel(%arg0: i32, %arg1: memref<1x1xf32, #tpu.memory_space<smem>>, %arg2: memref<32x128xf32, #tpu.memory_space<vmem>>, %arg3: memref<32x128xf32, #tpu.memory_space<vmem>>, %arg4: memref<2x128xf32, #tpu.memory_space<vmem>>, %arg5: memref<1x128xf32, #tpu.memory_space<vmem>>) attributes {dimension_semantics = [#tpu.dimension_semantics<parallel>], iteration_bounds = array<i64: 1>, scalar_prefetch = 0 : i64, scratch_operands = 0 : i64, tpu.core_type = #tpu.core_type<tc>, window_params = [{transform_indices = @transform_0, window_bounds = array<i64: 1, 1>}, {transform_indices = @transform_1, window_bounds = array<i64: 32, 128>}, {transform_indices = @transform_2, window_bounds = array<i64: 32, 128>}, {transform_indices = @transform_3, window_bounds = array<i64: 2, 128>}, {transform_indices = @transform_4, window_bounds = array<i64: 1, 128>}]} {
    %c0 = arith.constant 0 : index
    %c0_0 = arith.constant 0 : index
    %0 = vector.load %arg2[%c0, %c0_0] : memref<32x128xf32, #tpu.memory_space<vmem>>, vector<32x128xf32>
    %c0_1 = arith.constant 0 : index
    %c0_2 = arith.constant 0 : index
    %1 = vector.load %arg3[%c0_1, %c0_2] : memref<32x128xf32, #tpu.memory_space<vmem>>, vector<32x128xf32>
    %2 = arith.mulf %0, %1 : vector<32x128xf32>
    %cst = arith.constant dense<0.000000e+00> : vector<128xf32>
    %3 = vector.multi_reduction <add>, %2, %cst [0] : vector<32x128xf32> to vector<128xf32>
    %4 = vector.shape_cast %3 : vector<128xf32> to vector<1x128xf32>
    %c0_3 = arith.constant 0 : index
    %c0_4 = arith.constant 0 : index
    %5 = vector.load %arg4[%c0_3, %c0_4] : memref<2x128xf32, #tpu.memory_space<vmem>>, vector<2x128xf32>
    %cst_5 = arith.constant dense<0.000000e+00> : vector<128xf32>
    %6 = vector.multi_reduction <add>, %5, %cst_5 [0] : vector<2x128xf32> to vector<128xf32>
    %7 = vector.shape_cast %6 : vector<128xf32> to vector<1x128xf32>
    %8 = arith.addf %4, %7 : vector<1x128xf32>
    %c0_6 = arith.constant 0 : index
    %c0_7 = arith.constant 0 : index
    %9 = memref.load %arg1[%c0_6, %c0_7] : memref<1x1xf32, #tpu.memory_space<smem>>
    %10 = vector.broadcast %9 : f32 to vector<1x128xf32>
    %11 = arith.addf %8, %10 : vector<1x128xf32>
    %c0_8 = arith.constant 0 : index
    %c0_9 = arith.constant 0 : index
    %12 = vector.load %arg5[%c0_8, %c0_9] : memref<1x128xf32, #tpu.memory_space<vmem>>, vector<1x128xf32>
    tpu.vector_store %arg5[%c0_8, %c0_9], %11 {strides = array<i32>} : memref<1x128xf32, #tpu.memory_space<vmem>>, vector<1x128xf32>,
    return
  }
  func.func @transform_0(%arg0: i32) -> (i32, i32) {
    %c0_i32 = arith.constant 0 : i32
    %c0_i32_0 = arith.constant 0 : i32
    %c0_i32_1 = arith.constant 0 : i32
    return %c0_i32, %c0_i32_0 : i32, i32
  }
  func.func @transform_1(%arg0: i32) -> (i32, i32) {
    %c0_i32 = arith.constant 0 : i32
    %c0_i32_0 = arith.constant 0 : i32
    return %c0_i32, %arg0 : i32, i32
  }
  func.func @transform_2(%arg0: i32) -> (i32, i32) {
    %c0_i32 = arith.constant 0 : i32
    %c0_i32_0 = arith.constant 0 : i32
    return %c0_i32, %arg0 : i32, i32
  }
  func.func @transform_3(%arg0: i32) -> (i32, i32) {
    %c0_i32 = arith.constant 0 : i32
    %c0_i32_0 = arith.constant 0 : i32
    return %c0_i32, %arg0 : i32, i32
  }
  func.func @transform_4(%arg0: i32) -> (i32, i32) {
    %c0_i32 = arith.constant 0 : i32
    %c0_i32_0 = arith.constant 0 : i32
    return %c0_i32, %arg0 : i32, i32
  }
}

</mosaic_0001>

<bundles_post_ra>
// kernel: tpu_custom_call.1
= control target key start
LH: loop header
LB: loop body
LE: loop exit
PB: predicated region body
PF: predicated region fallthrough
CT: control target
= control target key end

     0   :  { %10 = vsyncpa [#allocation4], 0  ;;  %s247_s0 = inlined_call_operand.<no memory space> [shape: f32[1,1], index: 0, kind: input, shape index: {}]   ;;  %s248_s1 = inlined_call_operand.hbm [shape: f32[32,128], index: 1, kind: input, shape index: {}]   ;;  %s249_s2 = inlined_call_operand.hbm [shape: f32[32,128], index: 2, kind: input, shape index: {}]   ;;  %s250_s3 = inlined_call_operand.vmem [shape: f32[2,128], index: 3, kind: input, shape index: {}]   ;;  %s251_s4 = inlined_call_operand.hbm [shape: f32[1,128], index: 4, kind: output, shape index: {}]  }
   0x1   :  { %11 = vsyncpa [#allocation7], 0 }
   0x2   :  { %12 = vsyncpa [#allocation5], 0  ;;  %s175_s15 = smov [#allocation3]   ;;  %s103_s19 = scalar_lea.hbm %s248_s1, 512 }
   0x3   :  { %s20_s16 = sshll.u32 %s175_s15, 4  ;;  %p104_p0 = scmp.ne.s32.totalorder %s248_s1, %s103_s19  ;;  %s21_s16 = int_to_ptr.vmem [resolvable:$true] %s20_s16 }
   0x4   :  { %p107_p1 = scmp.lt.u32.totalorder %s103_s19, %s248_s1 }
   0x6   :  { %p109_p2 = pnand %p107_p1, %p104_p0 }
   0x8   :  { %112 = shalt.err (!%p109_p2)
}
   0x9   :  { %s113_s24 = scalar_lea.vmem %s21_s16, 512  ;;  %p118_p4 = scmp.lt.s32.totalorder %s21_s16, %s21_s16 }
   0xa   :  { %p114_p3 = scmp.ne.s32.totalorder %s21_s16, %s113_s24  ;;  %p119_p5 = scmp.lt.s32.totalorder %s113_s24, %s113_s24 }
   0xc   :  { %p120_p6 = por %p119_p5, %p118_p4 }
   0xe   :  { %p121_p7 = pnand %p120_p6, %p114_p3 }
  0x10   :  { %124 = shalt.err (!%p121_p7)
}
  0x11   :  { %s176_s25 = smov 128   ;;  %s177_s26 = smov 8  }
  0x12   :  { %26 = dma.hbm_to_vmem [thread:$0]  %s248_s1, 512, %s21_s16, [#allocation4], %s176_s25, %s176_s25, %s177_s26  }
  0x13   :  { %s178_s29 = smov [#allocation6]   ;;  %s125_s7 = scalar_lea.hbm %s249_s2, 512 }
  0x14   :  { %s32_s30 = sshll.u32 %s178_s29, 4  ;;  %p126_p8 = scmp.ne.s32.totalorder %s249_s2, %s125_s7  ;;  %s33_s30 = int_to_ptr.vmem [resolvable:$true] %s32_s30 }
  0x15   :  { %p129_p9 = scmp.lt.u32.totalorder %s125_s7, %s249_s2 }
  0x17   :  { %p131_p10 = pnand %p129_p9, %p126_p8 }
  0x19   :  { %134 = shalt.err (!%p131_p10)
}
  0x1a   :  { %s135_s12 = scalar_lea.vmem %s33_s30, 512  ;;  %p140_p12 = scmp.lt.s32.totalorder %s33_s30, %s33_s30 }
  0x1b   :  { %p136_p11 = scmp.ne.s32.totalorder %s33_s30, %s135_s12  ;;  %p141_p13 = scmp.lt.s32.totalorder %s135_s12, %s135_s12 }
  0x1d   :  { %p142_p0 = por %p141_p13, %p140_p12 }
  0x1f   :  { %p143_p1 = pnand %p142_p0, %p136_p11 }
  0x21   :  { %146 = shalt.err (!%p143_p1)
}
  0x22   :  { %38 = dma.hbm_to_vmem [thread:$0]  %s249_s2, 512, %s33_s30, [#allocation7], %s176_s25, %s176_s25, %s177_s26  }
  0x23   :  { %169 = dma.done.wait [#allocation4], 512  }
  0x24   :  { %170 = vsyncadd [#allocation4], 4294966784 }
  0x25   :  { %171 = dma.done.wait [#allocation7], 512  }
  0x26   :  { %172 = vsyncadd [#allocation7], 4294966784  ;;  %v47_v0 = vld [vmem:[#allocation3] sm:$0xff]  ;;  %v48_v1 = vld [vmem:[#allocation3 + $0x8] sm:$0xff]  ;;  %vm69_vm0 = vcmask 1041408   ;;  %v79_v29 = vstv %s247_s0  ;;  %s179_s16 = smov [#allocation8]  }
  0x27   :  { %v49_v2 = vld [vmem:[#allocation3 + $0x10] sm:$0xff]  ;;  %v50_v3 = vld [vmem:[#allocation3 + $0x18] sm:$0xff]  ;;  %v51_v4 = vld [vmem:[#allocation6] sm:$0xff]  ;;  %s88_s17 = sshll.u32 %s179_s16, 4  ;;  %s89_s17 = int_to_ptr.vmem [resolvable:$true] %s88_s17 }
  0x28   :  { %v52_v5 = vld [vmem:[#allocation6 + $0x8] sm:$0xff]  ;;  %v53_v6 = vld [vmem:[#allocation6 + $0x10] sm:$0xff]  ;;  %v54_v7 = vld [vmem:[#allocation6 + $0x18] sm:$0xff]  ;;  %v55_v8 = vmul.f32 %v51_v4, %v47_v0  ;;  %s147_s18 = scalar_lea.vmem %s89_s17, 16  ;;  %s151_s19 = scalar_lea.vmem %s89_s17, 32 }
  0x29   :  { %v56_v9 = vmul.f32 %v52_v5, %v48_v1  ;;  %v68_v10 = vld [vmem:[%s250_s3] sm:$0x3]  ;;  %v57_v11 = vmul.f32 %v53_v6, %v49_v2  ;;  %v58_v13 = vmul.f32 %v54_v7, %v50_v3  ;;  %p148_p2 = scmp.ne.s32.totalorder %s89_s17, %s147_s18  ;;  %p152_p3 = scmp.lt.s32.totalorder %s89_s17, %s89_s17 }
  0x2a   :  { %v70_v12 = vsel %vm69_vm0, %v68_v10, 0.0  ;;  %p153_p4 = scmp.lt.s32.totalorder %s151_s19, %s147_s18 }
  0x2b   :  { %v59_v14 = vadd.f32 %v56_v9, %v55_v8  ;;  %v71_v15 = vrot.slane %v70_v12, 4 }
  0x2c   :  { %p154_p5 = por %p153_p4, %p152_p3 }
  0x2d   :  { %v60_v16 = vadd.f32 %v59_v14, %v57_v11  ;;  %v72_v17 = vadd.f32 %v71_v15, %v70_v12 }
  0x2e   :  { %p155_p6 = pnand %p154_p5, %p148_p2 }
  0x2f   :  { %v61_v18 = vadd.f32 %v60_v16, %v58_v13  ;;  %v73_v19 = vrot.slane %v72_v17, 2 }
  0x31   :  { %v62_v20 = vrot.slane %v61_v18, 4  ;;  %v74_v21 = vadd.f32 %v73_v19, %v72_v17 }
  0x33   :  { %v63_v22 = vadd.f32 %v62_v20, %v61_v18  ;;  %v75_v24 = vrot.slane %v74_v21, 1 }
  0x35   :  { %v64_v23 = vrot.slane %v63_v22, 2  ;;  %v76_v27 = vadd.f32 %v75_v24, %v74_v21 }
  0x37   :  { %v65_v25 = vadd.f32 %v64_v23, %v63_v22 }
  0x39   :  { %v66_v26 = vrot.slane %v65_v25, 1 }
  0x3b   :  { %v67_v28 = vadd.f32 %v66_v26, %v65_v25 }
  0x3d   :  { %v77_v30 = vadd.f32 %v76_v27, %v67_v28 }
  0x3f   :  { %v80_v31 = vadd.f32 %v79_v29, %v77_v30 }
  0x41   :  { %81 = vst [vmem:[#allocation8] sm:$0x1] %v80_v31 }
  0x42   :  { %158 = shalt.err (!%p155_p6)
}
  0x43   :  { %s159_s22 = scalar_lea.hbm %s251_s4, 16 }
  0x44   :  { %p160_p7 = scmp.ne.s32.totalorder %s251_s4, %s159_s22  ;;  %p163_p8 = scmp.lt.u32.totalorder %s159_s22, %s251_s4 }
  0x46   :  { %p165_p9 = pnand %p163_p8, %p160_p7 }
  0x48   :  { %168 = shalt.err (!%p165_p9)
}
  0x49   :  { %91 = dma.vmem_to_hbm [thread:$0]  %s89_s17, 16, %s251_s4, [#allocation5]  }
  0x4a   :  { %173 = dma.done.wait [#allocation5], 16  }
  0x4b   :  { %174 = vsyncadd [#allocation5], 4294967280 }
  0x4c   :  { %95 = vsyncpa [#allocation4], 1 }
  0x4d   :  { %96 = vsyncpa [#allocation7], 1 }
  0x4e   :  { %97 = vsyncpa [#allocation5], 1 }

</bundles_post_ra>
